<compile_context>
chip_gen: v5e
topology: v5e:2x2
jax: 0.10.0
libtpu: 0.0.40
codegen_flags: <defaults>
</compile_context>

<pallas_src>
import jax
import jax.numpy as jnp
from jax import lax
from jax.experimental import pallas as pl
from jax.experimental.pallas import tpu as pltpu

_LANE = 128
_SUBLANE = 8
_MIN_ROWS = 16      # minimum slab/tile rows (covers bf16 sublane packing)
_SUB_ROWS = 128     # compute sub-slab rows: keeps the elementwise chain in vregs


def _round_down(x, m):
    return (x // m) * m


def _default_num_parallel():
    """2 where one Pallas program spans two TensorCores (v4/v5p megacore, v7x)."""
    try:
        kind = jax.devices()[0].device_kind.lower()
    except Exception:
        return 1
    return 2 if (("v4" in kind) or ("v5p" in kind) or ("7" in kind)) else 1


def weighted_mse_loss(output, target, *, max_tile_rows=2048, num_parallel=None):
    """mean(exp(-|output - target|) * (output - target)**2) as a Pallas TPU kernel."""
    assert output.shape == target.shape, (output.shape, target.shape)
    total = int(output.size)
    assert total > 0

    if num_parallel is None:
        num_parallel = _default_num_parallel()
    max_tile_rows = max(_MIN_ROWS, _round_down(int(max_tile_rows), _MIN_ROWS))

    # ---- lane-dense slab geometry (all Python ints, trace time) ----
    rows = max(pl.cdiv(total, _LANE), _MIN_ROWS)          # slab rows
    padded_total = rows * _LANE                           # == total in the common case
    tr = min(max_tile_rows, _round_down(rows, _MIN_ROWS))  # DMA tile rows (<= rows)
    sub = min(_SUB_ROWS, tr)                              # compute sub-slab rows
    n_full = tr // sub
    rem = tr - n_full * sub                               # multiple of 16 (maybe 0)
    num_blocks = pl.cdiv(rows, tr)
    np_ = max(1, min(int(num_parallel), num_blocks))
    steps = pl.cdiv(num_blocks, np_)
    inv_total = 1.0 / total
    # In-kernel index arithmetic is int32.
    assert padded_total + 2 * tr * _LANE < 2 ** 31, "tensor too large for int32 indexing"

    def to_slab(x):
        # f32 / bf16 stream natively (the kernel casts per tile); other dtypes take
        # one cast pass here (rare for a loss input).
        if x.dtype != jnp.float32 and x.dtype != jnp.bfloat16:
            x = x.astype(jnp.float32)
        flat = x.reshape(-1)                              # free: contiguous reshape
        if padded_total != total:
            # Only lane-ragged numels / tiny tensors pay this copy; the padded
            # zeros are additionally masked out inside the kernel.
            flat = jnp.pad(flat, (0, padded_total - total))
        return flat.reshape(rows, _LANE)                  # free: contiguous reshape

    out2d = to_slab(output)
    tgt2d = to_slab(target)

    def kernel(out_ref, tgt_ref, o_ref, acc_ref):
        p = pl.program_id(0)
        i = pl.program_id(1)
        gb = p * steps + i                                # global (unclamped) row-block

        @pl.when(i == 0)
        def _init():
            acc_ref[...] = jnp.zeros_like(acc_ref)

        def flat_iota(h):
            # Flat element offset of each (row, lane) position within a chunk.
            return (lax.broadcasted_iota(jnp.int32, (h, _LANE), 0) * _LANE
                    + lax.broadcasted_iota(jnp.int32, (h, _LANE), 1))

        def chunk(r0, h, fiota):
            x = out_ref[pl.ds(r0, h), :]
            y = tgt_ref[pl.ds(r0, h), :]
            if x.dtype == y.dtype:
                d = (x - y).astype(jnp.float32)           # narrow sub + single cast
            else:
                d = x.astype(jnp.float32) - y.astype(jnp.float32)
            if fiota is not None:
                start = (gb * tr + r0) * _LANE            # first flat index of chunk
                d = jnp.where(start + fiota < total, d, 0.0)
            wse = jnp.exp(-jnp.abs(d)) * d * d            # VPU + EUP
            # Layout-preserving fold into the vreg-shaped accumulator (pure VALU adds).
            acc_ref[...] += wse.reshape(h // _SUBLANE, _SUBLANE, _LANE).sum(axis=0)

        def accumulate(masked):
            fi = flat_iota(sub) if masked else None       # hoisted out of the loop
            if n_full:
                def body(j, carry):
                    chunk(pl.multiple_of(j * sub, sub), sub, fi)
                    return carry
                lax.fori_loop(0, n_full, body, 0, unroll=True)
            if rem:
                chunk(n_full * sub, rem, flat_iota(rem) if masked else None)

        # Hot path (no masking) for blocks fully inside the valid element range;
        # masked path only for the tail / duplicate (clamped) blocks.
        fully_valid = (gb + 1) * (tr * _LANE) <= total

        @pl.when(fully_valid)
        def _hot():
            accumulate(False)

        @pl.when(jnp.logical_not(fully_valid))
        def _tail():
            accumulate(True)

        @pl.when(i == steps - 1)
        def _finalize():
            acc = acc_ref[...]
            per_lane = jnp.sum(acc, axis=0, keepdims=True)   # (1, 128) sublane reduce
            tot = jnp.sum(per_lane, axis=1, keepdims=True)   # (1, 1)   lane reduce
            o_ref[...] = tot * inv_total                     # mean over true count

    # Clamp OOB block indices (when np_*steps > num_blocks) to the last real block;
    # the kernel's mask then zeroes the duplicate's contribution.
    in_index = lambda pp, ii: (jnp.minimum(pp * steps + ii, num_blocks - 1), 0)

    cost = pl.CostEstimate(
        flops=6 * total,
        transcendentals=total,
        bytes_accessed=total * (out2d.dtype.itemsize + tgt2d.dtype.itemsize) + 4 * np_,
    )

    partials = pl.pallas_call(
        kernel,
        out_shape=jax.ShapeDtypeStruct((np_, 1, 1), jnp.float32),
        grid_spec=pltpu.PrefetchScalarGridSpec(
            num_scalar_prefetch=0,
            grid=(np_, steps),
            in_specs=[
                pl.BlockSpec((tr, _LANE), in_index),
                pl.BlockSpec((tr, _LANE), in_index),
            ],
            # Per-p scalar output; resident across the reduction axis.
            out_specs=pl.BlockSpec((None, 1, 1), lambda pp, ii: (pp, 0, 0)),
            scratch_shapes=[pltpu.VMEM((_SUBLANE, _LANE), jnp.float32)],
        ),
        compiler_params=pltpu.CompilerParams(
            dimension_semantics=("parallel", "arbitrary"),
            vmem_limit_bytes=32 * 1024 * 1024,
        ),
        cost_estimate=cost,
    )(out2d, tgt2d)

    if np_ == 1:
        return partials.reshape(())          # kernel already produced the final mean
    return jnp.sum(partials)                 # tiny: one add per extra TensorCore


if __name__ == "__main__":
    key = jax.random.PRNGKey(0)
    k1, k2, k3, k4, k5, k6 = jax.random.split(key, 6)

    def ref_loss(o, t):
        d = o.astype(jnp.float32) - t.astype(jnp.float32)
        return jnp.mean(jnp.exp(-jnp.abs(d)) * d * d)

    # Behavioural-cloning style regression output, NCHW.
    x_shape = (2, 4, 16, 16)
    o1 = jax.random.normal(k1, x_shape, dtype=jnp.float32)
    t1 = jax.random.normal(k2, x_shape, dtype=jnp.float32)
    l1 = weighted_mse_loss(o1, t1)
    jax.block_until_ready(l1)
    assert jnp.allclose(l1, ref_loss(o1, t1), rtol=1e-5, atol=1e-6), (l1, ref_loss(o1, t1))

    # Lane-ragged numel (not a multiple of 128): exercises the masked tail path.
    y_shape = (2, 3, 7, 5)
    o2 = jax.random.normal(k3, y_shape, dtype=jnp.float32)
    t2 = jax.random.normal(k4, y_shape, dtype=jnp.float32)
    l2 = weighted_mse_loss(o2, t2)
    jax.block_until_ready(l2)
    assert jnp.allclose(l2, ref_loss(o2, t2), rtol=1e-5, atol=1e-6), (l2, ref_loss(o2, t2))

    # Larger, pad-free multi-block case: exercises the unrolled sub-slab loop,
    # the partial last row-block and (on 2-TensorCore chips) the parallel axis.
    z_shape = (8, 16, 32, 96)
    o3 = jax.random.normal(k5, z_shape, dtype=jnp.float32)
    t3 = jax.random.normal(k6, z_shape, dtype=jnp.float32)
    l3 = weighted_mse_loss(o3, t3)
    jax.block_until_ready(l3)
    assert jnp.allclose(l3, ref_loss(o3, t3), rtol=1e-4, atol=1e-6), (l3, ref_loss(o3, t3))

    print("KERNEL_OK")
</pallas_src>

<mosaic_0001>
module attributes {stable_mosaic.version = 11 : i64} {
  func.func @kernel(%arg0: i32, %arg1: i32, %arg2: memref<16x128xf32, #tpu.memory_space<vmem>>, %arg3: memref<16x128xf32, #tpu.memory_space<vmem>>, %arg4: memref<1x1x1xf32, #tpu.memory_space<vmem>>, %arg5: memref<8x128xf32, #tpu.memory_space<vmem>>) attributes {dimension_semantics = [#tpu.dimension_semantics<parallel>, #tpu.dimension_semantics<arbitrary>], iteration_bounds = array<i64: 1, 1>, scalar_prefetch = 0 : i64, scratch_operands = 1 : i64, tpu.core_type = #tpu.core_type<tc>, window_params = [{transform_indices = @transform_0, window_bounds = array<i64: 16, 128>}, {transform_indices = @transform_1, window_bounds = array<i64: 16, 128>}, {transform_indices = @transform_2, window_bounds = array<i64: 1, 1, 1>}]} {
    %c1_i32 = arith.constant 1 : i32
    %0 = arith.muli %arg0, %c1_i32 : i32
    %1 = arith.addi %0, %arg1 : i32
    %c0_i32 = arith.constant 0 : i32
    %2 = arith.cmpi eq, %arg1, %c0_i32 : i32
    %3 = arith.extui %2 : i1 to i32
    %c0_i32_0 = arith.constant 0 : i32
    %4 = arith.cmpi ne, %3, %c0_i32_0 : i32
    scf.if %4 {
      %cst = arith.constant 0.000000e+00 : f32
      %16 = vector.broadcast %cst : f32 to vector<8x128xf32>
      %c0 = arith.constant 0 : index
      %c0_7 = arith.constant 0 : index
      %17 = vector.load %arg5[%c0, %c0_7] : memref<8x128xf32, #tpu.memory_space<vmem>>, vector<8x128xf32>
      tpu.vector_store %arg5[%c0, %c0_7], %16 {strides = array<i32>} : memref<8x128xf32, #tpu.memory_space<vmem>>, vector<8x128xf32>,
    } else {
    }
    %c1_i32_1 = arith.constant 1 : i32
    %5 = arith.addi %1, %c1_i32_1 : i32
    %c2048_i32 = arith.constant 2048 : i32
    %6 = arith.muli %5, %c2048_i32 : i32
    %c2048_i32_2 = arith.constant 2048 : i32
    %7 = arith.cmpi sle, %6, %c2048_i32_2 : i32
    %8 = arith.extui %7 : i1 to i32
    %c0_i32_3 = arith.constant 0 : i32
    %9 = arith.cmpi ne, %8, %c0_i32_3 : i32
    scf.if %9 {
      %c0_i32_7 = arith.constant 0 : i32
      %c16_i32 = arith.constant 16 : i32
      %16 = arith.muli %c0_i32_7, %c16_i32 : i32
      %17 = tpu.assume_multiple %16, 16 : i32
      %18 = arith.index_cast %17 : i32 to index
      %c0 = arith.constant 0 : index
      %19 = vector.load %arg2[%18, %c0] : memref<16x128xf32, #tpu.memory_space<vmem>>, vector<16x128xf32>
      %20 = arith.index_cast %17 : i32 to index
      %c0_8 = arith.constant 0 : index
      %21 = vector.load %arg3[%20, %c0_8] : memref<16x128xf32, #tpu.memory_space<vmem>>, vector<16x128xf32>
      %22 = arith.subf %19, %21 : vector<16x128xf32>
      %23 = math.absf %22 : vector<16x128xf32>
      %cst = arith.constant 0.000000e+00 : f32
      %24 = vector.broadcast %cst : f32 to vector<16x128xf32>
      %25 = arith.subf %24, %23 : vector<16x128xf32>
      %26 = math.exp %25 : vector<16x128xf32>
      %27 = arith.mulf %26, %22 : vector<16x128xf32>
      %28 = arith.mulf %27, %22 : vector<16x128xf32>
      %c0_9 = arith.constant 0 : index
      %c0_10 = arith.constant 0 : index
      %29 = vector.load %arg5[%c0_9, %c0_10] : memref<8x128xf32, #tpu.memory_space<vmem>>, vector<8x128xf32>
      %30 = vector.shape_cast %28 : vector<16x128xf32> to vector<2x8x128xf32>
      %cst_11 = arith.constant dense<0.000000e+00> : vector<8x128xf32>
      %31 = vector.multi_reduction <add>, %30, %cst_11 [0] : vector<2x8x128xf32> to vector<8x128xf32>
      %32 = arith.addf %29, %31 : vector<8x128xf32>
      %c0_12 = arith.constant 0 : index
      %c0_13 = arith.constant 0 : index
      %33 = vector.load %arg5[%c0_12, %c0_13] : memref<8x128xf32, #tpu.memory_space<vmem>>, vector<8x128xf32>
      tpu.vector_store %arg5[%c0_12, %c0_13], %32 {strides = array<i32>} : memref<8x128xf32, #tpu.memory_space<vmem>>, vector<8x128xf32>,
      %c1_i32_14 = arith.constant 1 : i32
    } else {
    }
    %true = arith.constant true
    %10 = arith.xori %7, %true : i1
    %11 = arith.extui %10 : i1 to i32
    %c0_i32_4 = arith.constant 0 : i32
    %12 = arith.cmpi ne, %11, %c0_i32_4 : i32
    scf.if %12 {
      %16 = tpu.iota {dimensions = array<i32: 0>} : vector<16x128xi32>
      %c128_i32 = arith.constant 128 : i32
      %17 = vector.broadcast %c128_i32 : i32 to vector<16x128xi32>
      %18 = arith.muli %16, %17 : vector<16x128xi32>
      %19 = tpu.iota {dimensions = array<i32: 1>} : vector<16x128xi32>
      %20 = arith.addi %18, %19 : vector<16x128xi32>
      %c0_i32_7 = arith.constant 0 : i32
      %c16_i32 = arith.constant 16 : i32
      %21 = arith.muli %c0_i32_7, %c16_i32 : i32
      %22 = tpu.assume_multiple %21, 16 : i32
      %23 = arith.index_cast %22 : i32 to index
      %c0 = arith.constant 0 : index
      %24 = vector.load %arg2[%23, %c0] : memref<16x128xf32, #tpu.memory_space<vmem>>, vector<16x128xf32>
      %25 = arith.index_cast %22 : i32 to index
      %c0_8 = arith.constant 0 : index
      %26 = vector.load %arg3[%25, %c0_8] : memref<16x128xf32, #tpu.memory_space<vmem>>, vector<16x128xf32>
      %27 = arith.subf %24, %26 : vector<16x128xf32>
      %c16_i32_9 = arith.constant 16 : i32
      %28 = arith.muli %1, %c16_i32_9 : i32
      %29 = arith.addi %28, %22 : i32
      %c128_i32_10 = arith.constant 128 : i32
      %30 = arith.muli %29, %c128_i32_10 : i32
      %31 = vector.broadcast %30 : i32 to vector<16x128xi32>
      %32 = arith.addi %31, %20 : vector<16x128xi32>
      %c2048_i32_11 = arith.constant 2048 : i32
      %33 = vector.broadcast %c2048_i32_11 : i32 to vector<16x128xi32>
      %34 = arith.cmpi slt, %32, %33 : vector<16x128xi32>
      %cst = arith.constant 0.000000e+00 : f32
      %35 = vector.broadcast %cst : f32 to vector<16x128xf32>
      %36 = arith.select %34, %27, %35 : vector<16x128xi1>, vector<16x128xf32>
      %37 = math.absf %36 : vector<16x128xf32>
      %cst_12 = arith.constant 0.000000e+00 : f32
      %38 = vector.broadcast %cst_12 : f32 to vector<16x128xf32>
      %39 = arith.subf %38, %37 : vector<16x128xf32>
      %40 = math.exp %39 : vector<16x128xf32>
      %41 = arith.mulf %40, %36 : vector<16x128xf32>
      %42 = arith.mulf %41, %36 : vector<16x128xf32>
      %c0_13 = arith.constant 0 : index
      %c0_14 = arith.constant 0 : index
      %43 = vector.load %arg5[%c0_13, %c0_14] : memref<8x128xf32, #tpu.memory_space<vmem>>, vector<8x128xf32>
      %44 = vector.shape_cast %42 : vector<16x128xf32> to vector<2x8x128xf32>
      %cst_15 = arith.constant dense<0.000000e+00> : vector<8x128xf32>
      %45 = vector.multi_reduction <add>, %44, %cst_15 [0] : vector<2x8x128xf32> to vector<8x128xf32>
      %46 = arith.addf %43, %45 : vector<8x128xf32>
      %c0_16 = arith.constant 0 : index
      %c0_17 = arith.constant 0 : index
      %47 = vector.load %arg5[%c0_16, %c0_17] : memref<8x128xf32, #tpu.memory_space<vmem>>, vector<8x128xf32>
      tpu.vector_store %arg5[%c0_16, %c0_17], %46 {strides = array<i32>} : memref<8x128xf32, #tpu.memory_space<vmem>>, vector<8x128xf32>,
      %c1_i32_18 = arith.constant 1 : i32
    } else {
    }
    %c0_i32_5 = arith.constant 0 : i32
    %13 = arith.cmpi eq, %arg1, %c0_i32_5 : i32
    %14 = arith.extui %13 : i1 to i32
    %c0_i32_6 = arith.constant 0 : i32
    %15 = arith.cmpi ne, %14, %c0_i32_6 : i32
    scf.if %15 {
      %c0 = arith.constant 0 : index
      %c0_7 = arith.constant 0 : index
      %16 = vector.load %arg5[%c0, %c0_7] : memref<8x128xf32, #tpu.memory_space<vmem>>, vector<8x128xf32>
      %cst = arith.constant dense<0.000000e+00> : vector<128xf32>
      %17 = vector.multi_reduction <add>, %16, %cst [0] : vector<8x128xf32> to vector<128xf32>
      %18 = vector.shape_cast %17 : vector<128xf32> to vector<1x128xf32>
      %cst_8 = arith.constant dense<0.000000e+00> : vector<1xf32>
      %19 = vector.multi_reduction <add>, %18, %cst_8 [1] : vector<1x128xf32> to vector<1xf32>
      %20 = vector.shape_cast %19 : vector<1xf32> to vector<1x1xf32>
      %cst_9 = arith.constant 4.8828125E-4 : f32
      %21 = vector.broadcast %cst_9 : f32 to vector<1x1xf32>
      %22 = arith.mulf %20, %21 : vector<1x1xf32>
      %c0_10 = arith.constant 0 : index
      %c0_11 = arith.constant 0 : index
      %c0_12 = arith.constant 0 : index
      %23 = vector.load %arg4[%c0_10, %c0_11, %c0_12] : memref<1x1x1xf32, #tpu.memory_space<vmem>>, vector<1x1x1xf32>
      %24 = vector.shape_cast %23 : vector<1x1x1xf32> to vector<1x1xf32>
      %25 = vector.shape_cast %22 : vector<1x1xf32> to vector<1x1x1xf32>
      tpu.vector_store %arg4[%c0_10, %c0_11, %c0_12], %25 {strides = array<i32>} : memref<1x1x1xf32, #tpu.memory_space<vmem>>, vector<1x1x1xf32>,
    } else {
    }
    return
  }
  func.func @transform_0(%arg0: i32, %arg1: i32) -> (i32, i32) {
    %c1_i32 = arith.constant 1 : i32
    %0 = arith.muli %arg0, %c1_i32 : i32
    %1 = arith.addi %0, %arg1 : i32
    %c0_i32 = arith.constant 0 : i32
    %2 = arith.minsi %1, %c0_i32 : i32
    %c0_i32_0 = arith.constant 0 : i32
    %c0_i32_1 = arith.constant 0 : i32
    return %2, %c0_i32_0 : i32, i32
  }
  func.func @transform_1(%arg0: i32, %arg1: i32) -> (i32, i32) {
    %c1_i32 = arith.constant 1 : i32
    %0 = arith.muli %arg0, %c1_i32 : i32
    %1 = arith.addi %0, %arg1 : i32
    %c0_i32 = arith.constant 0 : i32
    %2 = arith.minsi %1, %c0_i32 : i32
    %c0_i32_0 = arith.constant 0 : i32
    %c0_i32_1 = arith.constant 0 : i32
    return %2, %c0_i32_0 : i32, i32
  }
  func.func @transform_2(%arg0: i32, %arg1: i32) -> (i32, i32, i32) {
    %c0_i32 = arith.constant 0 : i32
    %c0_i32_0 = arith.constant 0 : i32
    %c0_i32_1 = arith.constant 0 : i32
    return %arg0, %c0_i32, %c0_i32_0 : i32, i32, i32
  }
}

</mosaic_0001>

<bundles_post_ra>
// kernel: tpu_custom_call.1
= control target key start
LH: loop header
LB: loop body
LE: loop exit
PB: predicated region body
PF: predicated region fallthrough
CT: control target
= control target key end

     0   :  { %7 = vsyncpa [#allocation4], 0  ;;  %s296_s0 = inlined_call_operand.hbm [shape: f32[16,128], index: 0, kind: input, shape index: {}]   ;;  %s297_s1 = inlined_call_operand.hbm [shape: f32[16,128], index: 1, kind: input, shape index: {}]   ;;  %s298_s2 = inlined_call_operand.hbm [shape: f32[1,1,1], index: 2, kind: output, shape index: {}]  }
   0x1   :  { %8 = vsyncpa [#allocation7], 0 }
   0x2   :  { %9 = vsyncpa [#allocation5], 0  ;;  %s20_s11 = sshll.u32 %s296_s0, 4  ;;  %s267_s12 = smov [#allocation3]   ;;  %s21_s11 = int_to_ptr.hbm [resolvable:$true] %s20_s11 }
   0x3   :  { %s22_s13 = sshll.u32 %s267_s12, 4  ;;  %s39_s16 = sshll.u32 %s297_s1, 4  ;;  %s23_s13 = int_to_ptr.vmem [resolvable:$true] %s22_s13  ;;  %s40_s16 = int_to_ptr.hbm [resolvable:$true] %s39_s16 }
   0x4   :  { %s268_s17 = smov 128   ;;  %s269_s18 = smov 8  }
   0x5   :  { %28 = dma.hbm_to_vmem [thread:$0]  %s21_s11, 256, %s23_s13, [#allocation4], %s268_s17, %s268_s17, %s269_s18  }
   0x6   :  { %s270_s19 = smov [#allocation6]  }
   0x7   :  { %s41_s20 = sshll.u32 %s270_s19, 4  ;;  %s42_s20 = int_to_ptr.vmem [resolvable:$true] %s41_s20 }
   0x8   :  { %47 = dma.hbm_to_vmem [thread:$0]  %s40_s16, 256, %s42_s20, [#allocation7], %s268_s17, %s268_s17, %s269_s18  }
   0x9   :  { %261 = dma.done.wait [#allocation4], 256  }
   0xa   :  { %262 = vsyncadd [#allocation4], 4294967040 }
   0xb   :  { %263 = dma.done.wait [#allocation7], 256  }
   0xc   :  { %264 = vsyncadd [#allocation7], 4294967040  ;;  %v76_v0 = vld [vmem:[#allocation3] sm:$0xff]  ;;  %v77_v1 = vld [vmem:[#allocation3 + $0x8] sm:$0xff]  ;;  %s271_s0 = smov [#allocation8]   ;;  %s165_s23 = sshll.u32 %s298_s2, 4  ;;  %s166_s23 = int_to_ptr.hbm [resolvable:$true] %s165_s23 }
   0xd   :  { %v78_v2 = vld [vmem:[#allocation6] sm:$0xff]  ;;  %v79_v3 = vld [vmem:[#allocation6 + $0x8] sm:$0xff]  ;;  %s163_s1 = sshll.u32 %s271_s0, 4  ;;  %vm156_vm0 = vcmask 0   ;;  %s164_s1 = int_to_ptr.vmem [resolvable:$true] %s163_s1 }
   0xe   :  { %v80_v4 = vsub.f32 %v76_v0, %v78_v2  ;;  %v81_v5 = vsub.f32 %v77_v1, %v79_v3 }
  0x10   :  { %v82_v6 = vand.u32 2147483647, %v80_v4  ;;  %v83_v7 = vand.u32 2147483647, %v81_v5 }
  0x12   :  { %v84_v8 = vsub.f32 0.0, %v82_v6  ;;  %v85_v9 = vsub.f32 0.0, %v83_v7 }
  0x14   :  { %v86_v10 = vmul.f32 1.442695, %v84_v8  ;;  %v88_v11 = vmul.f32 1.442695, %v85_v9 }
  0x16   :  { %185 = vpow2.f32 %v86_v10 }
  0x17   :  { %187 = vpow2.f32 %v88_v11 }
  0x1c   :  { %v186_v12 = vpop.eup %185 }
  0x1d   :  { %v188_v13 = vpop.eup %187  ;;  %v90_v14 = vmul.f32 %v186_v12, %v80_v4 }
  0x1e   :  { %v91_v15 = vmul.f32 %v188_v13, %v81_v5 }
  0x1f   :  { %v92_v16 = vmul.f32 %v90_v14, %v80_v4 }
  0x20   :  { %v93_v17 = vmul.f32 %v91_v15, %v81_v5 }
  0x22   :  { %v95_v18 = vadd.f32 %v93_v17, %v92_v16 }
  0x24   :  { %v147_v19 = vrot.slane %v95_v18, 4 }
  0x26   :  { %v148_v20 = vadd.f32 %v147_v19, %v95_v18 }
  0x28   :  { %v149_v21 = vrot.slane %v148_v20, 2 }
  0x2a   :  { %v150_v22 = vadd.f32 %v149_v21, %v148_v20 }
  0x2c   :  { %v151_v23 = vrot.slane %v150_v22, 1 }
  0x2e   :  { %v152_v24 = vadd.f32 %v151_v23, %v150_v22 }
  0x30   :  { %153 = vadd.xlane.f32.xlu0 %v152_v24 }
  0xa3   :  { %v154_v25 = vpop.xlane.xlu0 %153 }
  0xa4   :  { %v155_v26 = vmul.f32 0.00048828125, %v154_v25 }
  0xa6   :  { %157 = vst.msk [vmem:[#allocation8] sm:$0x1] %vm156_vm0, %v155_v26 }
  0xa7   :  { %168 = dma.vmem_to_hbm [thread:$0]  %s164_s1, 16, %s166_s23, [#allocation5]  }
  0xa8   :  { %265 = dma.done.wait [#allocation5], 16  }
  0xa9   :  { %266 = vsyncadd [#allocation5], 4294967280 }
  0xaa   :  { %173 = vsyncpa [#allocation4], 1 }
  0xab   :  { %174 = vsyncpa [#allocation7], 1 }
  0xac   :  { %175 = vsyncpa [#allocation5], 1 }

</bundles_post_ra>
